<compile_context>
chip_gen: v7x
topology: tpu7x:2x2x1
jax: 0.10.0
libtpu: 0.0.40
codegen_flags: <defaults>
</compile_context>

<pallas_src>
import functools
import math

import jax
import jax.numpy as jnp
from jax import lax
from jax.experimental import pallas as pl
from jax.experimental.pallas import tpu as pltpu


def _scatter_kernel(x_ref, wcat_ref, l_ref, o_ref):
    """One (TB, TE) row block.

    x_ref   : (TB, TE, N, F)     input rows (compute_dtype)
    wcat_ref: (F, 3F)            [W1 | W2 | W3] (compute_dtype)
    l_ref   : (3, N, N)          stacked [adj, H, H2] (compute_dtype)
    o_ref   : (TB, 3, TE, N, F)  output (f32), already in concatenated layout
    """
    TB, TE, N, F = x_ref.shape
    R = TB * TE

    # ---- Stage 1: one flat GEMM for every row in the block, all 3 weights fused.
    # (TB, TE, N, F) -> (R*N, F) is a leading-dim flatten (N divisible by 8 in
    # the intended shapes -> no relayout).
    x2 = x_ref[...].reshape(R * N, F)
    t = jnp.dot(x2, wcat_ref[...],
                preferred_element_type=jnp.float32)          # (R*N, 3F) f32 acc
    t = t.reshape(R, N, 3 * F)                               # leading-dim split: free

    # ---- Stage 2: batched wavelet/adjacency multiply, one slice per operator.
    for k in range(3):                                       # unrolled at trace time
        # static lane slice; cast down to the compute dtype so the bf16 path
        # actually runs bf16 on the MXU (no-op for the default f32 path).
        tk = t[:, :, k * F:(k + 1) * F].astype(l_ref.dtype)  # (R, N, F)
        lk = jnp.broadcast_to(l_ref[k], (R, N, N))           # (R, N, N)
        ok = lax.dot_general(
            lk, tk,
            dimension_numbers=(((2,), (1,)), ((0,), (0,))),  # sum_m L[n,m] * t[r,m,f]
            preferred_element_type=jnp.float32)              # (R, N, F) f32
        o_ref[:, k, :, :, :] = ok.reshape(TB, TE, N, F).astype(o_ref.dtype)


def scattering_layer_forward(x, w1, w2, w3, adj, *, num_elements,
                             block_rows=256,
                             compute_dtype=jnp.float32,
                             vmem_limit_bytes=32 * 1024 * 1024):
    """x: (B, num_elements, feat_dim, in_feat) -> (B, 3*num_elements, feat_dim, in_feat)."""
    B, E, N, F = x.shape
    assert E == num_elements, "num_elements mismatch"
    assert adj.shape == (N, N) and w1.shape == (F, F)

    # --- wavelet construction (parameter glue, plain JAX; matches the PyTorch module) ---
    I = jnp.eye(N, dtype=jnp.float32)
    fro2 = jnp.sum(adj.astype(jnp.float32) ** 2)             # ||A||_F ** 2
    P = 0.5 * (I + adj.astype(jnp.float32) / fro2)
    H = I - P                                                # wavelet1
    H2 = P - P @ P                                           # wavelet2

    w_cat = jnp.concatenate([w1, w2, w3], axis=1).astype(compute_dtype)        # (F, 3F)
    l_stack = jnp.stack([adj.astype(jnp.float32), H, H2], 0).astype(compute_dtype)  # (3, N, N)
    x_c = x.astype(compute_dtype)
    in_bytes = jnp.dtype(compute_dtype).itemsize
    cd_bytes = in_bytes

    # --- VMEM-aware row budget (per row: double-buffered x/out blocks + temporaries) ---
    row_bytes = (2 * N * F * in_bytes          # x block (2 pipeline buffers)
                 + 2 * 3 * N * F * 4           # out block (2 pipeline buffers, f32)
                 + 3 * N * F * 4               # stage-1 result t (f32)
                 + N * N * cd_bytes            # broadcast L (one operator live)
                 + N * F * 4)                  # stage-2 result (f32)
    max_rows = max(1, int(0.7 * vmem_limit_bytes) // max(1, row_bytes))
    block_rows = max(1, min(block_rows, max_rows))

    # --- row blocking: TB batch rows x TE element rows per grid step ---
    TE = min(E, block_rows)
    TB = max(1, min(B, block_rows // TE))
    B_pad = (B + TB - 1) // TB * TB
    E_pad = (E + TE - 1) // TE * TE
    if (B_pad, E_pad) != (B, E):
        x_c = jnp.pad(x_c, ((0, B_pad - B), (0, E_pad - E), (0, 0), (0, 0)))

    grid = (B_pad // TB, E_pad // TE)

    out = pl.pallas_call(
        _scatter_kernel,
        out_shape=jax.ShapeDtypeStruct((B_pad, 3, E_pad, N, F), jnp.float32),
        grid_spec=pltpu.PrefetchScalarGridSpec(
            num_scalar_prefetch=0,
            grid=grid,
            in_specs=[
                pl.BlockSpec((TB, TE, N, F), lambda b, e: (b, e, 0, 0)),   # x block
                pl.BlockSpec((F, 3 * F), lambda b, e: (0, 0)),             # W_cat (constant)
                pl.BlockSpec((3, N, N), lambda b, e: (0, 0, 0)),           # [adj,H,H2] (constant)
            ],
            out_specs=pl.BlockSpec((TB, 3, TE, N, F),
                                   lambda b, e: (b, 0, e, 0, 0)),
        ),
        compiler_params=pltpu.CompilerParams(
            dimension_semantics=("parallel", "parallel"),
            vmem_limit_bytes=vmem_limit_bytes),
    )(x_c, w_cat, l_stack)

    if (B_pad, E_pad) != (B, E):
        out = out[:B, :, :E]
    # (B, 3, E, N, F) -> (B, 3E, N, F): axes 1,2 are contiguous -> pure metadata reshape,
    # i.e. the torch.cat([out1, out2, out3], dim=1) layout with no extra HBM pass.
    return out.reshape(B, 3 * E, N, F)


def _reference(x, w1, w2, w3, adj):
    B, E, N, F = x.shape
    I = jnp.eye(N, dtype=jnp.float32)
    fro2 = jnp.sum(adj * adj)
    P = 0.5 * (I + adj / fro2)
    H = I - P
    H2 = P - P @ P
    xr = x.reshape(-1, N, F)
    o1 = jnp.einsum('nm,rmf->rnf', adj, xr @ w1).reshape(B, E, N, F)
    o2 = jnp.einsum('nm,rmf->rnf', H, xr @ w2).reshape(B, E, N, F)
    o3 = jnp.einsum('nm,rmf->rnf', H2, xr @ w3).reshape(B, E, N, F)
    return jnp.concatenate([o1, o2, o3], axis=1)


if __name__ == "__main__":
    # Small shapes consistent with the module.
    B, num_elements, feat_dim, in_feat = 2, 4, 16, 32

    key = jax.random.PRNGKey(0)
    k_x, k_w1, k_w2, k_w3, k_adj = jax.random.split(key, 5)

    stdv = 1.0 / math.sqrt(in_feat)
    w1 = jax.random.uniform(k_w1, (in_feat, in_feat), jnp.float32, -stdv, stdv)
    w2 = jax.random.uniform(k_w2, (in_feat, in_feat), jnp.float32, -stdv, stdv)
    w3 = jax.random.uniform(k_w3, (in_feat, in_feat), jnp.float32, -stdv, stdv)
    adj = jax.random.uniform(k_adj, (feat_dim, feat_dim), jnp.float32, -stdv, stdv)

    x = jax.random.normal(k_x, (B, num_elements, feat_dim, in_feat), jnp.float32)

    fwd = jax.jit(functools.partial(scattering_layer_forward,
                                    num_elements=num_elements))
    out = jax.block_until_ready(fwd(x, w1, w2, w3, adj))

    ref = _reference(x, w1, w2, w3, adj)
    assert out.shape == (B, 3 * num_elements, feat_dim, in_feat)
    assert jnp.allclose(out, ref, atol=3e-5, rtol=3e-5), \
        float(jnp.max(jnp.abs(out - ref)))

    print("KERNEL_OK")
</pallas_src>

<mosaic_0001>
module attributes {stable_mosaic.version = 11 : i64} {
  func.func @_scatter_kernel(%arg0: i32, %arg1: i32, %arg2: memref<2x4x16x32xf32, #tpu.memory_space<vmem>>, %arg3: memref<32x96xf32, #tpu.memory_space<vmem>>, %arg4: memref<3x16x16xf32, #tpu.memory_space<vmem>>, %arg5: memref<2x3x4x16x32xf32, #tpu.memory_space<vmem>>) attributes {dimension_semantics = [#tpu.dimension_semantics<parallel>, #tpu.dimension_semantics<parallel>], iteration_bounds = array<i64: 1, 1>, scalar_prefetch = 0 : i64, scratch_operands = 0 : i64, tpu.core_type = #tpu.core_type<tc>, window_params = [{transform_indices = @transform_0, window_bounds = array<i64: 2, 4, 16, 32>}, {pipeline_mode = #tpu.pipeline_mode<synchronous>, transform_indices = @transform_1, window_bounds = array<i64: 32, 96>}, {pipeline_mode = #tpu.pipeline_mode<synchronous>, transform_indices = @transform_2, window_bounds = array<i64: 3, 16, 16>}, {transform_indices = @transform_3, window_bounds = array<i64: 2, 3, 4, 16, 32>}]} {
    %c0 = arith.constant 0 : index
    %c0_0 = arith.constant 0 : index
    %c0_1 = arith.constant 0 : index
    %c0_2 = arith.constant 0 : index
    %0 = vector.load %arg2[%c0, %c0_0, %c0_1, %c0_2] : memref<2x4x16x32xf32, #tpu.memory_space<vmem>>, vector<2x4x16x32xf32>
    %1 = vector.shape_cast %0 : vector<2x4x16x32xf32> to vector<128x32xf32>
    %c0_3 = arith.constant 0 : index
    %c0_4 = arith.constant 0 : index
    %2 = vector.load %arg3[%c0_3, %c0_4] : memref<32x96xf32, #tpu.memory_space<vmem>>, vector<32x96xf32>
    %cst = arith.constant dense<0.000000e+00> : vector<128x96xf32>
    %3 = tpu.matmul %1, %2, %cst {dimension_numbers = #tpu.dot_dimension_numbers<[1], [0], [0], [1], [0, 0, 1, 1], [], []>} : vector<128x32xf32>, vector<32x96xf32>, vector<128x96xf32> -> vector<128x96xf32>
    %4 = vector.shape_cast %3 : vector<128x96xf32> to vector<8x16x96xf32>
    %5 = vector.extract_strided_slice %4 {offsets = [0, 0, 0], sizes = [8, 16, 32], strides = [1, 1, 1]} : vector<8x16x96xf32> to vector<8x16x32xf32>
    %c0_5 = arith.constant 0 : index
    %c0_6 = arith.constant 0 : index
    %c0_7 = arith.constant 0 : index
    %6 = vector.load %arg4[%c0_5, %c0_6, %c0_7] : memref<3x16x16xf32, #tpu.memory_space<vmem>>, vector<1x16x16xf32>
    %7 = vector.shape_cast %6 : vector<1x16x16xf32> to vector<16x16xf32>
    %8 = vector.shape_cast %7 : vector<16x16xf32> to vector<1x16x16xf32>
    %9 = vector.broadcast %8 : vector<1x16x16xf32> to vector<8x16x16xf32>
    %cst_8 = arith.constant dense<0.000000e+00> : vector<8x16x32xf32>
    %10 = tpu.matmul %9, %5, %cst_8 {dimension_numbers = #tpu.dot_dimension_numbers<[2], [1], [1], [2], [0, 0, 0, 1, 1, 2], [0], [0]>} : vector<8x16x16xf32>, vector<8x16x32xf32>, vector<8x16x32xf32> -> vector<8x16x32xf32>
    %11 = vector.shape_cast %10 : vector<8x16x32xf32> to vector<2x4x16x32xf32>
    %c0_9 = arith.constant 0 : index
    %c0_10 = arith.constant 0 : index
    %c0_11 = arith.constant 0 : index
    %c0_12 = arith.constant 0 : index
    %c0_13 = arith.constant 0 : index
    %12 = vector.load %arg5[%c0_9, %c0_10, %c0_11, %c0_12, %c0_13] : memref<2x3x4x16x32xf32, #tpu.memory_space<vmem>>, vector<2x1x4x16x32xf32>
    %13 = vector.shape_cast %12 : vector<2x1x4x16x32xf32> to vector<2x4x16x32xf32>
    %14 = vector.shape_cast %11 : vector<2x4x16x32xf32> to vector<2x1x4x16x32xf32>
    tpu.vector_store %arg5[%c0_9, %c0_10, %c0_11, %c0_12, %c0_13], %14 {strides = array<i32>} : memref<2x3x4x16x32xf32, #tpu.memory_space<vmem>>, vector<2x1x4x16x32xf32>,
    %15 = vector.extract_strided_slice %4 {offsets = [0, 0, 32], sizes = [8, 16, 32], strides = [1, 1, 1]} : vector<8x16x96xf32> to vector<8x16x32xf32>
    %c1 = arith.constant 1 : index
    %c0_14 = arith.constant 0 : index
    %c0_15 = arith.constant 0 : index
    %16 = vector.load %arg4[%c1, %c0_14, %c0_15] : memref<3x16x16xf32, #tpu.memory_space<vmem>>, vector<1x16x16xf32>
    %17 = vector.shape_cast %16 : vector<1x16x16xf32> to vector<16x16xf32>
    %18 = vector.shape_cast %17 : vector<16x16xf32> to vector<1x16x16xf32>
    %19 = vector.broadcast %18 : vector<1x16x16xf32> to vector<8x16x16xf32>
    %cst_16 = arith.constant dense<0.000000e+00> : vector<8x16x32xf32>
    %20 = tpu.matmul %19, %15, %cst_16 {dimension_numbers = #tpu.dot_dimension_numbers<[2], [1], [1], [2], [0, 0, 0, 1, 1, 2], [0], [0]>} : vector<8x16x16xf32>, vector<8x16x32xf32>, vector<8x16x32xf32> -> vector<8x16x32xf32>
    %21 = vector.shape_cast %20 : vector<8x16x32xf32> to vector<2x4x16x32xf32>
    %c0_17 = arith.constant 0 : index
    %c1_18 = arith.constant 1 : index
    %c0_19 = arith.constant 0 : index
    %c0_20 = arith.constant 0 : index
    %c0_21 = arith.constant 0 : index
    %22 = vector.load %arg5[%c0_17, %c1_18, %c0_19, %c0_20, %c0_21] : memref<2x3x4x16x32xf32, #tpu.memory_space<vmem>>, vector<2x1x4x16x32xf32>
    %23 = vector.shape_cast %22 : vector<2x1x4x16x32xf32> to vector<2x4x16x32xf32>
    %24 = vector.shape_cast %21 : vector<2x4x16x32xf32> to vector<2x1x4x16x32xf32>
    tpu.vector_store %arg5[%c0_17, %c1_18, %c0_19, %c0_20, %c0_21], %24 {strides = array<i32>} : memref<2x3x4x16x32xf32, #tpu.memory_space<vmem>>, vector<2x1x4x16x32xf32>,
    %25 = vector.extract_strided_slice %4 {offsets = [0, 0, 64], sizes = [8, 16, 32], strides = [1, 1, 1]} : vector<8x16x96xf32> to vector<8x16x32xf32>
    %c2 = arith.constant 2 : index
    %c0_22 = arith.constant 0 : index
    %c0_23 = arith.constant 0 : index
    %26 = vector.load %arg4[%c2, %c0_22, %c0_23] : memref<3x16x16xf32, #tpu.memory_space<vmem>>, vector<1x16x16xf32>
    %27 = vector.shape_cast %26 : vector<1x16x16xf32> to vector<16x16xf32>
    %28 = vector.shape_cast %27 : vector<16x16xf32> to vector<1x16x16xf32>
    %29 = vector.broadcast %28 : vector<1x16x16xf32> to vector<8x16x16xf32>
    %cst_24 = arith.constant dense<0.000000e+00> : vector<8x16x32xf32>
    %30 = tpu.matmul %29, %25, %cst_24 {dimension_numbers = #tpu.dot_dimension_numbers<[2], [1], [1], [2], [0, 0, 0, 1, 1, 2], [0], [0]>} : vector<8x16x16xf32>, vector<8x16x32xf32>, vector<8x16x32xf32> -> vector<8x16x32xf32>
    %31 = vector.shape_cast %30 : vector<8x16x32xf32> to vector<2x4x16x32xf32>
    %c0_25 = arith.constant 0 : index
    %c2_26 = arith.constant 2 : index
    %c0_27 = arith.constant 0 : index
    %c0_28 = arith.constant 0 : index
    %c0_29 = arith.constant 0 : index
    %32 = vector.load %arg5[%c0_25, %c2_26, %c0_27, %c0_28, %c0_29] : memref<2x3x4x16x32xf32, #tpu.memory_space<vmem>>, vector<2x1x4x16x32xf32>
    %33 = vector.shape_cast %32 : vector<2x1x4x16x32xf32> to vector<2x4x16x32xf32>
    %34 = vector.shape_cast %31 : vector<2x4x16x32xf32> to vector<2x1x4x16x32xf32>
    tpu.vector_store %arg5[%c0_25, %c2_26, %c0_27, %c0_28, %c0_29], %34 {strides = array<i32>} : memref<2x3x4x16x32xf32, #tpu.memory_space<vmem>>, vector<2x1x4x16x32xf32>,
    return
  }
  func.func @transform_0(%arg0: i32, %arg1: i32) -> (i32, i32, i32, i32) {
    %c0_i32 = arith.constant 0 : i32
    %c0_i32_0 = arith.constant 0 : i32
    %c0_i32_1 = arith.constant 0 : i32
    return %arg0, %arg1, %c0_i32, %c0_i32_0 : i32, i32, i32, i32
  }
  func.func @transform_1(%arg0: i32, %arg1: i32) -> (i32, i32) {
    %c0_i32 = arith.constant 0 : i32
    %c0_i32_0 = arith.constant 0 : i32
    %c0_i32_1 = arith.constant 0 : i32
    return %c0_i32, %c0_i32_0 : i32, i32
  }
  func.func @transform_2(%arg0: i32, %arg1: i32) -> (i32, i32, i32) {
    %c0_i32 = arith.constant 0 : i32
    %c0_i32_0 = arith.constant 0 : i32
    %c0_i32_1 = arith.constant 0 : i32
    %c0_i32_2 = arith.constant 0 : i32
    return %c0_i32, %c0_i32_0, %c0_i32_1 : i32, i32, i32
  }
  func.func @transform_3(%arg0: i32, %arg1: i32) -> (i32, i32, i32, i32, i32) {
    %c0_i32 = arith.constant 0 : i32
    %c0_i32_0 = arith.constant 0 : i32
    %c0_i32_1 = arith.constant 0 : i32
    %c0_i32_2 = arith.constant 0 : i32
    return %arg0, %c0_i32, %arg1, %c0_i32_0, %c0_i32_1 : i32, i32, i32, i32, i32
  }
}

</mosaic_0001>

<bundles_post_ra>
// kernel: scattering_layer_forward.1
= control target key start
LH: loop header
LB: loop body
LE: loop exit
PB: predicated region body
PF: predicated region fallthrough
CT: control target
= control target key end

     0   :  { %vm35_vm0 = vcmask 261120   ;;  %s3114_s0 = inlined_call_operand.vmem [shape: f32[2,4,16,32], index: 0, kind: input, shape index: {}]   ;;  %s3115_s1 = inlined_call_operand.vmem [shape: f32[32,96], index: 1, kind: input, shape index: {}]   ;;  %s3116_s2 = inlined_call_operand.vmem [shape: f32[3,16,16], index: 2, kind: input, shape index: {}]   ;;  %s3117_s3 = inlined_call_operand.hbm [shape: f32[2,3,4,16,32], index: 3, kind: output, shape index: {}]  }
   0x1   :  { %v31_v0 = vld [vmem:[%s3115_s1] sm:$0xff]  ;;  %v32_v1 = vld [vmem:[%s3115_s1 + $0x8] sm:$0xff]  ;;  %v33_v2 = vld [vmem:[%s3115_s1 + $0x10] sm:$0xff] }
   0x2   :  { %v2618_v3 = vpack.c.bf16 %v32_v1, %v31_v0  ;;  %v34_v4 = vld [vmem:[%s3115_s1 + $0x18] sm:$0xff]  ;;  %v15_v5 = vld [vmem:[%s3114_s0] sm:$0xff] }
   0x3   :  { %v2622_v6 = vpack.c.bf16 %v34_v4, %v33_v2  ;;  %2426 = vmatprep.mubr.msk.f32.mxu0 %vm35_vm0, %v15_v5 }
   0x4   :  { %2619 = vmatprep.subr.bf16.mxu0 %v2618_v3 }
   0x5   :  { %2621 = vmatpush3.bf16.msra.mxu0 %v2618_v3 }
   0x6   :  { %2623 = vmatprep.subr.bf16.mxu0 %v2622_v6 }
   0x7   :  { %8 = vsyncpa [#allocation3], 0  ;;  %v16_v7 = vld [vmem:[%s3114_s0 + $0x8] sm:$0xff]  ;;  %v17_v8 = vld [vmem:[%s3114_s0 + $0x10] sm:$0xff]  ;;  %vm231_vm1 = vcmask 130048   ;;  %s2831_s1 = smov 96  }
   0x8   :  { %v18_v9 = vld [vmem:[%s3114_s0 + $0x18] sm:$0xff]  ;;  %v19_v10 = vld [vmem:[%s3114_s0 + $0x20] sm:$0xff]  ;;  %v20_v11 = vld [vmem:[%s3114_s0 + $0x28] sm:$0xff]  ;;  %s2832_s29 = smov 64  }
   0x9   :  { %2625 = vmatpush3.bf16.msra.mxu0 %v2622_v6  ;;  %v21_v12 = vld [vmem:[%s3114_s0 + $0x30] sm:$0xff]  ;;  %v22_v13 = vld [vmem:[%s3114_s0 + $0x38] sm:$0xff]  ;;  %v23_v14 = vld [vmem:[%s3114_s0 + $0x40] sm:$0xff] }
   0xa   :  { %v24_v15 = vld [vmem:[%s3114_s0 + $0x48] sm:$0xff]  ;;  %v25_v16 = vld [vmem:[%s3114_s0 + $0x50] sm:$0xff]  ;;  %v26_v17 = vld [vmem:[%s3114_s0 + $0x58] sm:$0xff] }
   0xb   :  { %v27_v18 = vld [vmem:[%s3114_s0 + $0x60] sm:$0xff]  ;;  %v28_v19 = vld [vmem:[%s3114_s0 + $0x68] sm:$0xff]  ;;  %v29_v20 = vld [vmem:[%s3114_s0 + $0x70] sm:$0xff] }
   0xc   :  { %2427 = vmatmul.mubr.msk.f32.vlgmr.msra.gmra.mrb[0].mxu0 %vm35_vm0, %v16_v7  ;;  %v30_v21 = vld [vmem:[%s3114_s0 + $0x78] sm:$0xff]  ;;  %v2935_v22 = vld [vmem:[%s3116_s2] sm:$0xff]  ;;  %v2946_v28 = vld [vmem:[%s3116_s2 + $0x10] sm:$0xff] }
   0xd   :  { %2429 = vmatprep.mubr.msk.f32.mxu0 %vm35_vm0, %v17_v8  ;;  %2454 = vmatprep.mubr.msk.f32.mxu1 %vm231_vm1, %v2935_v22  ;;  %v2955_v32 = vld [vmem:[%s3116_s2 + $0x8] sm:$0xff]  ;;  %v3002_v0 = vld [vmem:[%s3116_s2 + $0x18] sm:$0xff] }
  0x10   :  { %2430 = vmatmul.mubr.msk.f32.gmra.mrb[2].mxu0 %vm35_vm0, %v18_v9 }
  0x11   :  { %2432 = vmatprep.mubr.msk.f32.mxu0 %vm35_vm0, %v19_v10 }
  0x14   :  { %2433 = vmatmul.mubr.msk.f32.gmra.mrb[4].mxu0 %vm35_vm0, %v20_v11 }
  0x15   :  { %2435 = vmatprep.mubr.msk.f32.mxu0 %vm35_vm0, %v21_v12 }
  0x18   :  { %2436 = vmatmul.mubr.msk.f32.gmra.mrb[6].mxu0 %vm35_vm0, %v22_v13 }
  0x19   :  { %2438 = vmatprep.mubr.msk.f32.mxu0 %vm35_vm0, %v23_v14 }
  0x1c   :  { %2439 = vmatmul.mubr.msk.f32.gmra.mrb[8].mxu0 %vm35_vm0, %v24_v15 }
  0x1d   :  { %2441 = vmatprep.mubr.msk.f32.mxu0 %vm35_vm0, %v25_v16 }
  0x20   :  { %2442 = vmatmul.mubr.msk.f32.gmra.mrb[10].mxu0 %vm35_vm0, %v26_v17 }
  0x21   :  { %2444 = vmatprep.mubr.msk.f32.mxu0 %vm35_vm0, %v27_v18 }
  0x24   :  { %2445 = vmatmul.mubr.msk.f32.gmra.mrb[12].mxu0 %vm35_vm0, %v28_v19 }
  0x25   :  { %2447 = vmatprep.mubr.msk.f32.mxu0 %vm35_vm0, %v29_v20 }
  0x28   :  { %2448 = vmatmul.mubr.msk.f32.gmra.mrb[14].mxu0 %vm35_vm0, %v30_v21 }
  0x29   :  { %2517 = vmatprep.mubr.msk.f32.mxu0 %vm231_vm1, %v2946_v28 }
  0xdf   :  { %v2428_v23 = vpop.f32.mrb[0].mxu0 }
  0xe0   :  { %v150_v24 = vpop.f32.mrb[1].mxu0 }
  0xe1   :  { %v2939_v25 = vpack.i.bf16 %v2428_v23, %v150_v24  ;;  %v2626_v26 = vpack.c.bf16 %v2428_v23, %v150_v24 }
  0xe3   :  { %2728 = vrot.lane.b32.xlu0 %v2939_v25, %s2831_s1  ;;  %v2431_v27 = vpop.f32.mrb[2].mxu0  ;;  %2627 = vmatprep.subr.bf16.mxu1 %v2626_v26 }
  0xe4   :  { %v160_v29 = vpop.f32.mrb[3].mxu0  ;;  %2629 = vmatpush3.bf16.msra.mxu1 %v2626_v26 }
  0xe5   :  { %v2950_v30 = vpack.i.bf16 %v2431_v27, %v160_v29  ;;  %v2630_v31 = vpack.c.bf16 %v2431_v27, %v160_v29 }
  0xe7   :  { %2733 = vrot.lane.b32.xlu0 %v2950_v30, %s2831_s1  ;;  %2631 = vmatprep.subr.bf16.mxu1 %v2630_v31  ;;  %v2434_v33 = vpop.f32.mrb[4].mxu0 }
  0xe8   :  { %2455 = vmatmul.mubr.msk.f32.vlgmr.msra.gmra.mrb[0].mxu1 %vm231_vm1, %v2955_v32  ;;  %v170_v34 = vpop.f32.mrb[5].mxu0 }
  0xe9   :  { %2633 = vmatpush3.bf16.msra.mxu1 %v2630_v31  ;;  %v2777_v35 = vpack.i.bf16 %v2434_v33, %v170_v34  ;;  %v2634_v36 = vpack.c.bf16 %v2434_v33, %v170_v34  ;;  %2461 = vmatprep.mubr.msk.f32.mxu1 %vm231_vm1, %v2935_v22  ;;  %v2284_v33 = vld [vmem:[%s3116_s2 + $0x20] sm:$0xff] }
  0xeb   :  { %v2437_v37 = vpop.f32.mrb[6].mxu0  ;;  %2738 = vrot.lane.b32.xlu1 %v2777_v35, %s2831_s1  ;;  %2635 = vmatprep.subr.bf16.mxu1 %v2634_v36 }
  0xec   :  { %v180_v38 = vpop.f32.mrb[7].mxu0  ;;  %2462 = vmatmul.mubr.msk.f32.vlgmr.msra.gmra.mrb[2].mxu1 %vm231_vm1, %v2955_v32 }
  0xed   :  { %v2782_v39 = vpack.i.bf16 %v2437_v37, %v180_v38  ;;  %v2638_v40 = vpack.c.bf16 %v2437_v37, %v180_v38  ;;  %2637 = vmatpush3.bf16.msra.mxu1 %v2634_v36  ;;  %2468 = vmatprep.mubr.msk.f32.mxu1 %vm231_vm1, %v2935_v22 }
  0xef   :  { %v2440_v41 = vpop.f32.mrb[8].mxu0  ;;  %2743 = vrot.lane.b32.xlu1 %v2782_v39, %s2831_s1  ;;  %2639 = vmatprep.subr.bf16.mxu1 %v2638_v40 }
  0xf0   :  { %v190_v42 = vpop.f32.mrb[9].mxu0  ;;  %2469 = vmatmul.mubr.msk.f32.vlgmr.msra.gmra.mrb[4].mxu1 %vm231_vm1, %v2955_v32 }
  0xf1   :  { %v2787_v43 = vpack.i.bf16 %v2440_v41, %v190_v42  ;;  %v2642_v44 = vpack.c.bf16 %v2440_v41, %v190_v42  ;;  %2641 = vmatpush3.bf16.msra.mxu1 %v2638_v40  ;;  %2475 = vmatprep.mubr.msk.f32.mxu1 %vm231_vm1, %v2935_v22 }
  0xf3   :  { %v2443_v45 = vpop.f32.mrb[10].mxu0  ;;  %2748 = vrot.lane.b32.xlu0 %v2787_v43, %s2831_s1  ;;  %2643 = vmatprep.subr.bf16.mxu1 %v2642_v44 }
  0xf4   :  { %v200_v46 = vpop.f32.mrb[11].mxu0  ;;  %2476 = vmatmul.mubr.msk.f32.vlgmr.msra.gmra.mrb[6].mxu1 %vm231_vm1, %v2955_v32 }
  0xf5   :  { %v2792_v47 = vpack.i.bf16 %v2443_v45, %v200_v46  ;;  %v2646_v48 = vpack.c.bf16 %v2443_v45, %v200_v46  ;;  %2645 = vmatpush3.bf16.msra.mxu1 %v2642_v44  ;;  %2482 = vmatprep.mubr.msk.f32.mxu1 %vm231_vm1, %v2935_v22 }
  0xf7   :  { %v2446_v49 = vpop.f32.mrb[12].mxu0  ;;  %2753 = vrot.lane.b32.xlu1 %v2792_v47, %s2831_s1  ;;  %2647 = vmatprep.subr.bf16.mxu1 %v2646_v48 }
  0xf8   :  { %v210_v50 = vpop.f32.mrb[13].mxu0  ;;  %2483 = vmatmul.mubr.msk.f32.vlgmr.msra.gmra.mrb[8].mxu1 %vm231_vm1, %v2955_v32 }
  0xf9   :  { %v2797_v51 = vpack.i.bf16 %v2446_v49, %v210_v50  ;;  %v2650_v52 = vpack.c.bf16 %v2446_v49, %v210_v50  ;;  %2649 = vmatpush3.bf16.msra.mxu1 %v2646_v48  ;;  %2489 = vmatprep.mubr.msk.f32.mxu1 %vm231_vm1, %v2935_v22 }
  0xfb   :  { %2758 = vrot.lane.b32.xlu0 %v2797_v51, %s2831_s1  ;;  %v2449_v53 = vpop.f32.mrb[14].mxu0  ;;  %2651 = vmatprep.subr.bf16.mxu1 %v2650_v52 }
  0xfc   :  { %v220_v54 = vpop.f32.mrb[15].mxu0  ;;  %2490 = vmatmul.mubr.msk.f32.vlgmr.msra.gmra.mrb[10].mxu1 %vm231_vm1, %v2955_v32 }
  0xfd   :  { %v2802_v55 = vpack.i.bf16 %v2449_v53, %v220_v54  ;;  %v2654_v56 = vpack.c.bf16 %v2449_v53, %v220_v54  ;;  %2653 = vmatpush3.bf16.msra.mxu1 %v2650_v52  ;;  %2496 = vmatprep.mubr.msk.f32.mxu1 %vm231_vm1, %v2935_v22 }
  0xff   :  { %2763 = vrot.lane.b32.xlu0 %v2939_v25, %s2832_s29  ;;  %2768 = vrot.lane.b32.xlu1 %v2802_v55, %s2831_s1 }
 0x100   :  { %2655 = vmatprep.subr.bf16.mxu1 %v2654_v56  ;;  %2497 = vmatmul.mubr.msk.f32.vlgmr.msra.gmra.mrb[12].mxu1 %vm231_vm1, %v2955_v32 }
 0x101   :  { %2657 = vmatpush3.bf16.msra.mxu1 %v2654_v56  ;;  %2503 = vmatprep.mubr.msk.f32.mxu1 %vm231_vm1, %v2935_v22 }
 0x103   :  { %2778 = vrot.lane.b32.xlu0 %v2777_v35, %s2832_s29  ;;  %2773 = vrot.lane.b32.xlu1 %v2950_v30, %s2832_s29 }
 0x104   :  { %2504 = vmatmul.mubr.msk.f32.vlgmr.msra.gmra.mrb[14].mxu1 %vm231_vm1, %v2955_v32 }
 0x105   :  { %2510 = vmatprep.mubr.msk.f32.mxu1 %vm231_vm1, %v2946_v28 }
 0x107   :  { %2788 = vrot.lane.b32.xlu0 %v2787_v43, %s2832_s29  ;;  %2783 = vrot.lane.b32.xlu1 %v2782_v39, %s2832_s29  ;;  %v2285_v39 = vld [vmem:[%s3116_s2 + $0x28] sm:$0xff]  ;;  %s2833_s2 = smov [#allocation2]  }
 0x108   :  { %s2223_s9 = sshll.u32 %s2833_s2, 4  ;;  %s2224_s9 = int_to_ptr.vmem [resolvable:$true] %s2223_s9 }
 0x109   :  { %s2807_s10 = scalar_lea.vmem %s2224_s9, 6144  ;;  %p2812_p1 = scmp.lt.s32.totalorder %s2224_s9, %s2224_s9 }
 0x10a   :  { %p2808_p0 = scmp.ne.s32.totalorder %s2224_s9, %s2807_s10  ;;  %p2813_p2 = scmp.lt.s32.totalorder %s2807_s10, %s2807_s10 }
 0x10b   :  { %2798 = vrot.lane.b32.xlu0 %v2797_v51, %s2832_s29  ;;  %2793 = vrot.lane.b32.xlu1 %v2792_v47, %s2832_s29 }
 0x10c   :  { %p2814_p3 = por %p2813_p2, %p2812_p1 }
 0x10e   :  { %p2815_p4 = pnand %p2814_p3, %p2808_p0 }
 0x10f   :  { %2803 = vrot.lane.b32.xlu1 %v2802_v55, %s2832_s29 }
 0x155   :  { %v2729_v57 = vpop.permute.xlu0 %2728 }
 0x156   :  { %v2731_v58 = vunpack.i.h.bf16 %v2729_v57  ;;  %v2730_v59 = vunpack.i.l.bf16 %v2729_v57 }
 0x158   :  { %v2658_v60 = vpack.c.bf16 %v2731_v58, %v2730_v59 }
 0x159   :  { %v2734_v61 = vpop.permute.xlu0 %2733 }
 0x15a   :  { %v2736_v62 = vunpack.i.h.bf16 %v2734_v61  ;;  %v2735_v63 = vunpack.i.l.bf16 %v2734_v61  ;;  %2659 = vmatprep.subr.bf16.mxu1 %v2658_v60 }
 0x15b   :  { %2661 = vmatpush3.bf16.msra.mxu1 %v2658_v60 }
 0x15c   :  { %v2662_v1 = vpack.c.bf16 %v2736_v62, %v2735_v63 }
 0x15d   :  { %v2739_v2 = vpop.permute.xlu1 %2738 }
 0x15e   :  { %2663 = vmatprep.subr.bf16.mxu0 %v2662_v1  ;;  %v2741_v3 = vunpack.i.h.bf16 %v2739_v2  ;;  %v2740_v4 = vunpack.i.l.bf16 %v2739_v2  ;;  %2511 = vmatmul.mubr.msk.f32.vlgmr.msra.gmra.mrb[16].mxu1 %vm231_vm1, %v3002_v0 }
 0x15f   :  { %2665 = vmatpush3.bf16.msra.mxu0 %v2662_v1  ;;  %2524 = vmatprep.mubr.msk.f32.mxu1 %vm231_vm1, %v2946_v28 }
 0x160   :  { %v2666_v5 = vpack.c.bf16 %v2741_v3, %v2740_v4 }
 0x161   :  { %v2744_v6 = vpop.permute.xlu1 %2743 }
 0x162   :  { %v2746_v7 = vunpack.i.h.bf16 %v2744_v6  ;;  %v2745_v8 = vunpack.i.l.bf16 %v2744_v6  ;;  %2667 = vmatprep.subr.bf16.mxu1 %v2666_v5  ;;  %2518 = vmatmul.mubr.msk.f32.vlgmr.msra.gmra.mrb[16].mxu0 %vm231_vm1, %v3002_v0 }
 0x163   :  { %2669 = vmatpush3.bf16.msra.mxu1 %v2666_v5  ;;  %2531 = vmatprep.mubr.msk.f32.mxu0 %vm231_vm1, %v2946_v28 }
 0x164   :  { %v2670_v9 = vpack.c.bf16 %v2746_v7, %v2745_v8 }
 0x165   :  { %v2749_v10 = vpop.permute.xlu0 %2748 }
 0x166   :  { %v2751_v11 = vunpack.i.h.bf16 %v2749_v10  ;;  %v2750_v12 = vunpack.i.l.bf16 %v2749_v10  ;;  %2671 = vmatprep.subr.bf16.mxu0 %v2670_v9  ;;  %2525 = vmatmul.mubr.msk.f32.vlgmr.msra.gmra.mrb[18].mxu1 %vm231_vm1, %v3002_v0 }
 0x167   :  { %2673 = vmatpush3.bf16.msra.mxu0 %v2670_v9  ;;  %2538 = vmatprep.mubr.msk.f32.mxu1 %vm231_vm1, %v2946_v28 }
 0x168   :  { %v2674_v13 = vpack.c.bf16 %v2751_v11, %v2750_v12 }
 0x169   :  { %v2754_v14 = vpop.permute.xlu1 %2753 }
 0x16a   :  { %v2756_v15 = vunpack.i.h.bf16 %v2754_v14  ;;  %v2755_v16 = vunpack.i.l.bf16 %v2754_v14  ;;  %2675 = vmatprep.subr.bf16.mxu1 %v2674_v13  ;;  %2532 = vmatmul.mubr.msk.f32.vlgmr.msra.gmra.mrb[18].mxu0 %vm231_vm1, %v3002_v0 }
 0x16b   :  { %2677 = vmatpush3.bf16.msra.mxu1 %v2674_v13  ;;  %2545 = vmatprep.mubr.msk.f32.mxu0 %vm231_vm1, %v2946_v28 }
 0x16c   :  { %v2678_v17 = vpack.c.bf16 %v2756_v15, %v2755_v16 }
 0x16d   :  { %v2759_v18 = vpop.permute.xlu0 %2758 }
 0x16e   :  { %v2761_v19 = vunpack.i.h.bf16 %v2759_v18  ;;  %v2760_v20 = vunpack.i.l.bf16 %v2759_v18  ;;  %2679 = vmatprep.subr.bf16.mxu0 %v2678_v17  ;;  %2539 = vmatmul.mubr.msk.f32.vlgmr.msra.gmra.mrb[20].mxu1 %vm231_vm1, %v3002_v0 }
 0x16f   :  { %2681 = vmatpush3.bf16.msra.mxu0 %v2678_v17  ;;  %2552 = vmatprep.mubr.msk.f32.mxu1 %vm231_vm1, %v2946_v28 }
 0x170   :  { %v2682_v21 = vpack.c.bf16 %v2761_v19, %v2760_v20 }
 0x171   :  { %v2764_v22 = vpop.permute.xlu0 %2763  ;;  %v2769_v23 = vpop.permute.xlu1 %2768 }
 0x172   :  { %v2766_v24 = vunpack.i.h.bf16 %v2764_v22  ;;  %v2765_v25 = vunpack.i.l.bf16 %v2764_v22  ;;  %v2771_v26 = vunpack.i.h.bf16 %v2769_v23  ;;  %v2770_v27 = vunpack.i.l.bf16 %v2769_v23  ;;  %2683 = vmatprep.subr.bf16.mxu1 %v2682_v21  ;;  %2546 = vmatmul.mubr.msk.f32.vlgmr.msra.gmra.mrb[20].mxu0 %vm231_vm1, %v3002_v0 }
 0x173   :  { %2685 = vmatpush3.bf16.msra.mxu1 %v2682_v21  ;;  %2559 = vmatprep.mubr.msk.f32.mxu0 %vm231_vm1, %v2946_v28 }
 0x174   :  { %v2690_v29 = vpack.c.bf16 %v2766_v24, %v2765_v25  ;;  %v2686_v30 = vpack.c.bf16 %v2771_v26, %v2770_v27 }
 0x175   :  { %v2779_v31 = vpop.permute.xlu0 %2778  ;;  %v2774_v32 = vpop.permute.xlu1 %2773 }
 0x176   :  { %v2781_v34 = vunpack.i.h.bf16 %v2779_v31  ;;  %v2780_v35 = vunpack.i.l.bf16 %v2779_v31  ;;  %v2776_v36 = vunpack.i.h.bf16 %v2774_v32  ;;  %v2775_v37 = vunpack.i.l.bf16 %v2774_v32  ;;  %2687 = vmatprep.subr.bf16.mxu0 %v2686_v30  ;;  %2691 = vmatprep.subr.bf16.mxu1 %v2690_v29 }
 0x177   :  { %2553 = vmatmul.mubr.msk.f32.vlgmr.msra.gmra.mrb[22].mxu1 %vm231_vm1, %v3002_v0  ;;  %2689 = vmatpush3.bf16.msra.mxu0 %v2686_v30 }
 0x178   :  { %v2698_v38 = vpack.c.bf16 %v2781_v34, %v2780_v35  ;;  %v2694_v28 = vpack.c.bf16 %v2776_v36, %v2775_v37  ;;  %2693 = vmatpush3.bf16.msra.mxu1 %v2690_v29  ;;  %2566 = vmatprep.mubr.msk.f32.mxu1 %vm231_vm1, %v2284_v33 }
 0x179   :  { %v2789_v40 = vpop.permute.xlu0 %2788  ;;  %v2784_v41 = vpop.permute.xlu1 %2783 }
 0x17a   :  { %v2791_v42 = vunpack.i.h.bf16 %v2789_v40  ;;  %v2790_v43 = vunpack.i.l.bf16 %v2789_v40  ;;  %v2786_v44 = vunpack.i.h.bf16 %v2784_v41  ;;  %v2785_v45 = vunpack.i.l.bf16 %v2784_v41  ;;  %2695 = vmatprep.subr.bf16.mxu0 %v2694_v28  ;;  %2699 = vmatprep.subr.bf16.mxu1 %v2698_v38 }
 0x17b   :  { %2560 = vmatmul.mubr.msk.f32.vlgmr.msra.gmra.mrb[22].mxu0 %vm231_vm1, %v3002_v0  ;;  %2567 = vmatmul.mubr.msk.f32.vlgmr.msra.gmra.mrb[24].mxu1 %vm231_vm1, %v2285_v39 }
 0x17c   :  { %v2706_v46 = vpack.c.bf16 %v2791_v42, %v2790_v43  ;;  %v2702_v47 = vpack.c.bf16 %v2786_v44, %v2785_v45  ;;  %2697 = vmatpush3.bf16.msra.mxu0 %v2694_v28  ;;  %2701 = vmatpush3.bf16.msra.mxu1 %v2698_v38 }
 0x17d   :  { %v2799_v48 = vpop.permute.xlu0 %2798  ;;  %v2794_v49 = vpop.permute.xlu1 %2793  ;;  %2573 = vmatprep.mubr.msk.f32.mxu0 %vm231_vm1, %v2284_v33  ;;  %2580 = vmatprep.mubr.msk.f32.mxu1 %vm231_vm1, %v2284_v33 }
 0x17e   :  { %v2801_v50 = vunpack.i.h.bf16 %v2799_v48  ;;  %v2800_v51 = vunpack.i.l.bf16 %v2799_v48  ;;  %v2796_v52 = vunpack.i.h.bf16 %v2794_v49  ;;  %v2795_v53 = vunpack.i.l.bf16 %v2794_v49  ;;  %2703 = vmatprep.subr.bf16.mxu0 %v2702_v47  ;;  %2707 = vmatprep.subr.bf16.mxu1 %v2706_v46 }
 0x17f   :  { %2574 = vmatmul.mubr.msk.f32.vlgmr.msra.gmra.mrb[24].mxu0 %vm231_vm1, %v2285_v39  ;;  %2581 = vmatmul.mubr.msk.f32.vlgmr.msra.gmra.mrb[26].mxu1 %vm231_vm1, %v2285_v39 }
 0x180   :  { %v2714_v54 = vpack.c.bf16 %v2801_v50, %v2800_v51  ;;  %v2710_v55 = vpack.c.bf16 %v2796_v52, %v2795_v53  ;;  %2705 = vmatpush3.bf16.msra.mxu0 %v2702_v47  ;;  %2709 = vmatpush3.bf16.msra.mxu1 %v2706_v46 }
 0x181   :  { %v2804_v56 = vpop.permute.xlu1 %2803  ;;  %2587 = vmatprep.mubr.msk.f32.mxu0 %vm231_vm1, %v2284_v33  ;;  %2594 = vmatprep.mubr.msk.f32.mxu1 %vm231_vm1, %v2284_v33 }
 0x182   :  { %v2806_v57 = vunpack.i.h.bf16 %v2804_v56  ;;  %v2805_v58 = vunpack.i.l.bf16 %v2804_v56  ;;  %2711 = vmatprep.subr.bf16.mxu0 %v2710_v55  ;;  %2715 = vmatprep.subr.bf16.mxu1 %v2714_v54 }
 0x183   :  { %2588 = vmatmul.mubr.msk.f32.vlgmr.msra.gmra.mrb[26].mxu0 %vm231_vm1, %v2285_v39  ;;  %2595 = vmatmul.mubr.msk.f32.vlgmr.msra.gmra.mrb[28].mxu1 %vm231_vm1, %v2285_v39 }
 0x184   :  { %v2718_v59 = vpack.c.bf16 %v2806_v57, %v2805_v58  ;;  %2713 = vmatpush3.bf16.msra.mxu0 %v2710_v55  ;;  %2717 = vmatpush3.bf16.msra.mxu1 %v2714_v54 }
 0x185   :  { %2601 = vmatprep.mubr.msk.f32.mxu0 %vm231_vm1, %v2284_v33  ;;  %2608 = vmatprep.mubr.msk.f32.mxu1 %vm231_vm1, %v2284_v33 }
 0x186   :  { %2719 = vmatprep.subr.bf16.mxu0 %v2718_v59 }
 0x187   :  { %2602 = vmatmul.mubr.msk.f32.vlgmr.msra.gmra.mrb[28].mxu0 %vm231_vm1, %v2285_v39  ;;  %2609 = vmatmul.mubr.msk.f32.vlgmr.msra.gmra.mrb[30].mxu1 %vm231_vm1, %v2285_v39 }
 0x188   :  { %2721 = vmatpush3.bf16.msra.mxu0 %v2718_v59  ;;  %2615 = vmatprep.mubr.msk.f32.mxu0 %vm231_vm1, %v2284_v33 }
 0x18b   :  { %2616 = vmatmul.mubr.msk.f32.vlgmr.msra.gmra.mrb[30].mxu0 %vm231_vm1, %v2285_v39 }
 0x1bb   :  { %v2456_v60 = vpop.f32.mrb[0].mxu1 }
 0x1bc   :  { %839 = vst.msk [vmem:[#allocation2 + $0x8] sm:$0xff] %vm35_vm0, %v2456_v60  ;;  %v304_v61 = vpop.f32.mrb[1].mxu1 }
 0x1bd   :  { %838 = vst.msk [vmem:[#allocation2] sm:$0xff] %vm35_vm0, %v304_v61 }
 0x1bf   :  { %v2463_v62 = vpop.f32.mrb[2].mxu1 }
 0x1c0   :  { %841 = vst.msk [vmem:[#allocation2 + $0x18] sm:$0xff] %vm35_vm0, %v2463_v62  ;;  %v379_v63 = vpop.f32.mrb[3].mxu1 }
 0x1c1   :  { %840 = vst.msk [vmem:[#allocation2 + $0x10] sm:$0xff] %vm35_vm0, %v379_v63 }
 0x1c3   :  { %v2470_v0 = vpop.f32.mrb[4].mxu1 }
 0x1c4   :  { %843 = vst.msk [vmem:[#allocation2 + $0x28] sm:$0xff] %vm35_vm0, %v2470_v0  ;;  %v454_v1 = vpop.f32.mrb[5].mxu1 }
 0x1c5   :  { %842 = vst.msk [vmem:[#allocation2 + $0x20] sm:$0xff] %vm35_vm0, %v454_v1 }
 0x1c7   :  { %v2477_v2 = vpop.f32.mrb[6].mxu1 }
 0x1c8   :  { %845 = vst.msk [vmem:[#allocation2 + $0x38] sm:$0xff] %vm35_vm0, %v2477_v2  ;;  %v529_v3 = vpop.f32.mrb[7].mxu1 }
 0x1c9   :  { %844 = vst.msk [vmem:[#allocation2 + $0x30] sm:$0xff] %vm35_vm0, %v529_v3 }
 0x1cb   :  { %v2484_v4 = vpop.f32.mrb[8].mxu1 }
 0x1cc   :  { %847 = vst.msk [vmem:[#allocation2 + $0xc8] sm:$0xff] %vm35_vm0, %v2484_v4  ;;  %v604_v5 = vpop.f32.mrb[9].mxu1 }
 0x1cd   :  { %846 = vst.msk [vmem:[#allocation2 + $0xc0] sm:$0xff] %vm35_vm0, %v604_v5 }
 0x1cf   :  { %v2491_v6 = vpop.f32.mrb[10].mxu1 }
 0x1d0   :  { %849 = vst.msk [vmem:[#allocation2 + $0xd8] sm:$0xff] %vm35_vm0, %v2491_v6  ;;  %v679_v7 = vpop.f32.mrb[11].mxu1 }
 0x1d1   :  { %848 = vst.msk [vmem:[#allocation2 + $0xd0] sm:$0xff] %vm35_vm0, %v679_v7 }
 0x1d3   :  { %v2498_v8 = vpop.f32.mrb[12].mxu1 }
 0x1d4   :  { %851 = vst.msk [vmem:[#allocation2 + $0xe8] sm:$0xff] %vm35_vm0, %v2498_v8  ;;  %v754_v9 = vpop.f32.mrb[13].mxu1 }
 0x1d5   :  { %850 = vst.msk [vmem:[#allocation2 + $0xe0] sm:$0xff] %vm35_vm0, %v754_v9 }
 0x1d7   :  { %v2505_v10 = vpop.f32.mrb[14].mxu1 }
 0x1d8   :  { %853 = vst.msk [vmem:[#allocation2 + $0xf8] sm:$0xff] %vm35_vm0, %v2505_v10  ;;  %v829_v11 = vpop.f32.mrb[15].mxu1 }
 0x1d9   :  { %852 = vst.msk [vmem:[#allocation2 + $0xf0] sm:$0xff] %vm35_vm0, %v829_v11 }
 0x231   :  { %v2512_v12 = vpop.f32.mrb[16].mxu1 }
 0x232   :  { %1529 = vst.msk [vmem:[#allocation2 + $0x48] sm:$0xff] %vm35_vm0, %v2512_v12  ;;  %v937_v13 = vpop.f32.mrb[17].mxu1 }
 0x233   :  { %1528 = vst.msk [vmem:[#allocation2 + $0x40] sm:$0xff] %vm35_vm0, %v937_v13 }
 0x235   :  { %v2519_v14 = vpop.f32.mrb[16].mxu0 }
 0x236   :  { %1531 = vst.msk [vmem:[#allocation2 + $0x58] sm:$0xff] %vm35_vm0, %v2519_v14  ;;  %v1020_v15 = vpop.f32.mrb[17].mxu0 }
 0x237   :  { %1530 = vst.msk [vmem:[#allocation2 + $0x50] sm:$0xff] %vm35_vm0, %v1020_v15 }
 0x239   :  { %v2526_v16 = vpop.f32.mrb[18].mxu1 }
 0x23a   :  { %1533 = vst.msk [vmem:[#allocation2 + $0x68] sm:$0xff] %vm35_vm0, %v2526_v16  ;;  %v1103_v17 = vpop.f32.mrb[19].mxu1 }
 0x23b   :  { %1532 = vst.msk [vmem:[#allocation2 + $0x60] sm:$0xff] %vm35_vm0, %v1103_v17 }
 0x23d   :  { %v2533_v18 = vpop.f32.mrb[18].mxu0 }
 0x23e   :  { %1535 = vst.msk [vmem:[#allocation2 + $0x78] sm:$0xff] %vm35_vm0, %v2533_v18  ;;  %v1186_v19 = vpop.f32.mrb[19].mxu0 }
 0x23f   :  { %1534 = vst.msk [vmem:[#allocation2 + $0x70] sm:$0xff] %vm35_vm0, %v1186_v19 }
 0x241   :  { %v2540_v20 = vpop.f32.mrb[20].mxu1 }
 0x242   :  { %1537 = vst.msk [vmem:[#allocation2 + $0x108] sm:$0xff] %vm35_vm0, %v2540_v20  ;;  %v1269_v21 = vpop.f32.mrb[21].mxu1 }
 0x243   :  { %1536 = vst.msk [vmem:[#allocation2 + $0x100] sm:$0xff] %vm35_vm0, %v1269_v21 }
 0x245   :  { %v2547_v22 = vpop.f32.mrb[20].mxu0 }
 0x246   :  { %1539 = vst.msk [vmem:[#allocation2 + $0x118] sm:$0xff] %vm35_vm0, %v2547_v22  ;;  %v1352_v23 = vpop.f32.mrb[21].mxu0 }
 0x247   :  { %1538 = vst.msk [vmem:[#allocation2 + $0x110] sm:$0xff] %vm35_vm0, %v1352_v23 }
 0x24a   :  { %v2554_v24 = vpop.f32.mrb[22].mxu1 }
 0x24b   :  { %1541 = vst.msk [vmem:[#allocation2 + $0x128] sm:$0xff] %vm35_vm0, %v2554_v24  ;;  %v1435_v25 = vpop.f32.mrb[23].mxu1 }
 0x24c   :  { %1540 = vst.msk [vmem:[#allocation2 + $0x120] sm:$0xff] %vm35_vm0, %v1435_v25 }
 0x24e   :  { %v2561_v26 = vpop.f32.mrb[22].mxu0  ;;  %v2568_v27 = vpop.f32.mrb[24].mxu1 }
 0x24f   :  { %1543 = vst.msk [vmem:[#allocation2 + $0x138] sm:$0xff] %vm35_vm0, %v2561_v26  ;;  %v1518_v29 = vpop.f32.mrb[23].mxu0  ;;  %2203 = vst.msk [vmem:[#allocation2 + $0x88] sm:$0xff] %vm35_vm0, %v2568_v27  ;;  %v1625_v30 = vpop.f32.mrb[25].mxu1 }
 0x250   :  { %1542 = vst.msk [vmem:[#allocation2 + $0x130] sm:$0xff] %vm35_vm0, %v1518_v29  ;;  %2202 = vst.msk [vmem:[#allocation2 + $0x80] sm:$0xff] %vm35_vm0, %v1625_v30 }
 0x252   :  { %v2575_v31 = vpop.f32.mrb[24].mxu0  ;;  %v2582_v32 = vpop.f32.mrb[26].mxu1 }
 0x253   :  { %2205 = vst.msk [vmem:[#allocation2 + $0x98] sm:$0xff] %vm35_vm0, %v2575_v31  ;;  %v1706_v33 = vpop.f32.mrb[25].mxu0  ;;  %2207 = vst.msk [vmem:[#allocation2 + $0xa8] sm:$0xff] %vm35_vm0, %v2582_v32  ;;  %v1787_v34 = vpop.f32.mrb[27].mxu1 }
 0x254   :  { %2204 = vst.msk [vmem:[#allocation2 + $0x90] sm:$0xff] %vm35_vm0, %v1706_v33  ;;  %2206 = vst.msk [vmem:[#allocation2 + $0xa0] sm:$0xff] %vm35_vm0, %v1787_v34 }
 0x256   :  { %v2589_v35 = vpop.f32.mrb[26].mxu0  ;;  %v2596_v36 = vpop.f32.mrb[28].mxu1 }
 0x257   :  { %2209 = vst.msk [vmem:[#allocation2 + $0xb8] sm:$0xff] %vm35_vm0, %v2589_v35  ;;  %v1868_v37 = vpop.f32.mrb[27].mxu0  ;;  %2211 = vst.msk [vmem:[#allocation2 + $0x148] sm:$0xff] %vm35_vm0, %v2596_v36  ;;  %v1949_v38 = vpop.f32.mrb[29].mxu1 }
 0x258   :  { %2208 = vst.msk [vmem:[#allocation2 + $0xb0] sm:$0xff] %vm35_vm0, %v1868_v37  ;;  %2210 = vst.msk [vmem:[#allocation2 + $0x140] sm:$0xff] %vm35_vm0, %v1949_v38 }
 0x25a   :  { %v2603_v28 = vpop.f32.mrb[28].mxu0  ;;  %v2610_v39 = vpop.f32.mrb[30].mxu1 }
 0x25b   :  { %2213 = vst.msk [vmem:[#allocation2 + $0x158] sm:$0xff] %vm35_vm0, %v2603_v28  ;;  %v2030_v40 = vpop.f32.mrb[29].mxu0  ;;  %2215 = vst.msk [vmem:[#allocation2 + $0x168] sm:$0xff] %vm35_vm0, %v2610_v39  ;;  %v2111_v41 = vpop.f32.mrb[31].mxu1 }
 0x25c   :  { %2212 = vst.msk [vmem:[#allocation2 + $0x150] sm:$0xff] %vm35_vm0, %v2030_v40  ;;  %2214 = vst.msk [vmem:[#allocation2 + $0x160] sm:$0xff] %vm35_vm0, %v2111_v41 }
 0x25e   :  { %v2617_v42 = vpop.f32.mrb[30].mxu0 }
 0x25f   :  { %2217 = vst.msk [vmem:[#allocation2 + $0x178] sm:$0xff] %vm35_vm0, %v2617_v42  ;;  %v2192_v43 = vpop.f32.mrb[31].mxu0 }
 0x260   :  { %2216 = vst.msk [vmem:[#allocation2 + $0x170] sm:$0xff] %vm35_vm0, %v2192_v43 }
 0x261   :  { %2818 = shalt.err (!%p2815_p4)
}
 0x262   :  { %s2819_s13 = scalar_lea.hbm %s3117_s3, 6144 }
 0x263   :  { %p2820_p5 = scmp.ne.s32.totalorder %s3117_s3, %s2819_s13  ;;  %p2823_p6 = scmp.lt.u32.totalorder %s2819_s13, %s3117_s3 }
 0x265   :  { %p2825_p7 = pnand %p2823_p6, %p2820_p5 }
 0x267   :  { %2828 = shalt.err (!%p2825_p7)
}
 0x268   :  { %s2834_s18 = smov 128   ;;  %s2835_s19 = smov 8  }
 0x269   :  { %2229 = dma.vmem_to_hbm [thread:$0]  %s2224_s9, 6144, %s3117_s3, [#allocation3], %s2834_s18, %s2834_s18, %s2835_s19  }
 0x26a   :  { %2829 = dma.done.wait [#allocation3], 6144  }
 0x26b   :  { %2830 = vsyncadd [#allocation3], 4294961152 }
 0x26c   :  { %2233 = vsyncpa [#allocation3], 1 }

</bundles_post_ra>
